<compile_context>
chip_gen: v6e
topology: v6e:2x2x1
jax: 0.10.0
libtpu: 0.0.40
codegen_flags: <defaults>
</compile_context>

<pallas_src>
import numpy as np
import jax
import jax.numpy as jnp
from jax import lax
from jax.experimental import pallas as pl
from jax.experimental.pallas import tpu as pltpu


# ----------------------------- Pallas kernel --------------------------------

def peq_decoder_kernel(x_ref, w1_ref, w2_ref, bias_ref, out_ref):
    # x_ref   : (B, M, N)      latent
    # w1_ref  : (3C, M)        row-stacked dense_1 weights (gs rows pre-scaled 0.5)
    # w2_ref  : (B*N, B*3S)    pre-transposed dense_2 weights, block-diagonal over batch
    # bias_ref: (3C, B*3S)     folded biases placed on the decoder-matched diag blocks
    # out_ref : (B, C, LPAD)   packed [Gs|twoRs|c_hps|c_bps|c_lps|cs|pad], LPAD%128==0
    B, M, N = x_ref.shape
    threeC = w1_ref.shape[0]
    C = threeC // 3
    S = bias_ref.shape[1] // (3 * B)
    BS = B * S
    LPAD = out_ref.shape[-1]

    f32 = jnp.float32
    ln10 = f32(np.log(10.0))
    two_over_ln2 = f32(2.0 / np.log(2.0))       # 2 / softplus(0), precomputed
    sqrt2 = f32(np.sqrt(2.0))
    half_pi = f32(0.5 * np.pi)

    # ---- 2 MXU matmuls for ALL batches and all three decoders ----------------
    x_pk = jnp.concatenate([x_ref[bb] for bb in range(B)], axis=-1)      # (M, B*N)
    tmp = jnp.dot(w1_ref[...], x_pk, preferred_element_type=f32)         # (3C, B*N)
    full = jnp.dot(tmp, w2_ref[...], preferred_element_type=f32)         # (3C, B*3S)
    full = full + bias_ref[...]                                          # folded biases

    # ---- gather the decoder-matched (diagonal) blocks into lane-dense tiles --
    # gs: rows [0,C),   cols [b*3S + 0, b*3S + S)
    # tr: rows [C,2C),  cols [b*3S + S, b*3S + 2S)
    # cs: rows [2C,3C), cols [b*3S + 2S, b*3S + 3S)
    g_in = jnp.concatenate(
        [full[0:C, bb * 3 * S: bb * 3 * S + S] for bb in range(B)], axis=-1)       # (C, BS)
    tr_in = jnp.concatenate(
        [full[C:2 * C, bb * 3 * S + S: bb * 3 * S + 2 * S] for bb in range(B)], axis=-1)
    cs_in = jnp.concatenate(
        [full[2 * C:3 * C, bb * 3 * S + 2 * S: bb * 3 * S + 3 * S] for bb in range(B)], axis=-1)
    sp_in = jnp.concatenate([tr_in, cs_in], axis=-1)                                # (C, 2*BS)

    # ---- activations on lane-dense tiles --------------------------------------
    # Gs = tan(0.5 * sigmoid(gs_raw) * pi); g_in already holds 0.5*gs_raw (weight fold),
    # so sigmoid(gs_raw) = 0.5 + 0.5*tanh(g_in).  tan via sin * refined reciprocal(cos):
    # no f32 divide; one Newton step keeps ~1e-8 relative error.  (Saturated latents,
    # a -> pi/2, still blow up exactly like the reference tan would.)
    a = half_pi * (0.5 + 0.5 * jnp.tanh(g_in))                                      # (C, BS)
    cos_a = jnp.cos(a)
    r = pl.reciprocal(cos_a, approx=True)
    r = r * (2.0 - cos_a * r)                    # Newton refinement of the EUP vrcp
    gs = jnp.sin(a) * r                                                              # (C, BS)

    sp = jnp.logaddexp(sp_in, 0.0)               # one softplus over [twoRs | cs]     (C, 2BS)
    twors_flat = two_over_ln2 * sp[:, :BS]                                           # (C, BS)
    cs = jnp.exp(-ln10 * sp[:, BS:])             # 10**(-softplus(cs-3)); -3 folded in bias

    # ---- endpoint (shelf) handling --------------------------------------------
    pos_s = lax.broadcasted_iota(jnp.int32, (C, S), 1)
    pos = jnp.concatenate([pos_s for _ in range(B)], axis=-1)                        # (C, BS)
    is_first = pos == 0
    is_last = pos == (S - 1)
    is_edge = jnp.logical_or(is_first, is_last)
    ones = jnp.ones((C, BS), f32)

    twors = twors_flat + jnp.where(is_edge, sqrt2, f32(0.0))
    sqrt_cs = jnp.sqrt(cs)
    c_hps = jnp.where(is_last, cs, ones)
    c_lps = jnp.where(is_first, cs, ones)
    c_bps = twors * jnp.where(is_edge, sqrt_cs, cs)

    # ---- ONE unmasked lane-dense (C, LPAD) store per batch ---------------------
    pad_w = LPAD - 6 * S
    for bb in range(B):
        sl = slice(bb * S, (bb + 1) * S)
        parts = [gs[:, sl], twors[:, sl], c_hps[:, sl],
                 c_bps[:, sl], c_lps[:, sl], cs[:, sl]]
        if pad_w > 0:
            parts.append(jnp.zeros((C, pad_w), f32))
        out_ref[bb] = jnp.concatenate(parts, axis=-1)                                # (C, LPAD)


# ------------------------------ wrapper --------------------------------------

def _eff_bias(b1, w2, b2):
    # Fold dense_1 bias through dense_2 (exact: no nonlinearity in between):
    # b_eff[c, s] = b1[c] * sum_n W2[s, n] + b2[s]
    return b1[:, None] * jnp.sum(w2, axis=1)[None, :] + b2[None, :]


def pack_peq_params(p, batch, parallel=True):
    """Hoistable weight packing (call once per parameter set / batch size)."""
    C, M = p["gs_w1"].shape
    S, N = p["gs_w2"].shape
    # parallel=False scales the LATENT by 1/sqrt(S) for twoRs/cs -> fold into their W1 only.
    sc = 1.0 if parallel else 1.0 / float(np.sqrt(S))
    # Row-stacked dense_1 weights; gs rows absorb the 0.5 of sigmoid = 0.5*(1+tanh(0.5 x)).
    w1_all = jnp.concatenate(
        [0.5 * p["gs_w1"], sc * p["tr_w1"], sc * p["cs_w1"]], axis=0)            # (3C, M)
    # Pre-transposed, column-stacked dense_2 weights, block-diagonal over batch.
    w2_cat = jnp.concatenate(
        [p["gs_w2"].T, p["tr_w2"].T, p["cs_w2"].T], axis=1)                      # (N, 3S)
    w2_big = jnp.kron(jnp.eye(batch, dtype=jnp.float32),
                      w2_cat.astype(jnp.float32))                                # (B*N, B*3S)
    # Folded biases on the decoder-matched diagonal blocks (zeros elsewhere),
    # with the gs 0.5 scale and the cs "-3" shift pre-applied.
    b_gs = 0.5 * _eff_bias(p["gs_b1"], p["gs_w2"], p["gs_b2"])
    b_tr = _eff_bias(p["tr_b1"], p["tr_w2"], p["tr_b2"])
    b_cs = _eff_bias(p["cs_b1"], p["cs_w2"], p["cs_b2"]) - 3.0
    bias_blk = jnp.zeros((3 * C, 3 * S), jnp.float32)
    bias_blk = bias_blk.at[0:C, 0:S].set(b_gs)
    bias_blk = bias_blk.at[C:2 * C, S:2 * S].set(b_tr)
    bias_blk = bias_blk.at[2 * C:3 * C, 2 * S:3 * S].set(b_cs)
    bias_slab = jnp.tile(bias_blk, (1, batch))                                   # (3C, B*3S)
    return (w1_all.astype(jnp.float32), w2_big.astype(jnp.float32),
            bias_slab.astype(jnp.float32))


@jax.jit
def peq_decoder(latent, packed):
    # TODO(synk): at larger batch (or many parameter sets) add a leading 'parallel'
    # grid axis to use both v7x TensorCores; at B=2 the serial-grid overhead loses.
    w1_all, w2_big, bias_slab = packed
    B, M, N = latent.shape
    threeC, S3B = bias_slab.shape
    C = threeC // 3
    S = S3B // (3 * B)
    LPAD = ((6 * S + 127) // 128) * 128          # 128-aligned packed output lanes

    vmem = pl.BlockSpec(memory_space=pltpu.MemorySpace.VMEM)
    flops = 2 * threeC * M * (B * N) + 2 * threeC * (B * N) * S3B
    transcendentals = B * C * S * 9              # tanh, sin, cos, rcp, 2x(exp,log1p), exp, sqrt
    bytes_accessed = 4 * (latent.size + w1_all.size + w2_big.size
                          + bias_slab.size + B * C * LPAD)

    out = pl.pallas_call(
        peq_decoder_kernel,
        out_shape=jax.ShapeDtypeStruct((B, C, LPAD), jnp.float32),
        in_specs=[vmem, vmem, vmem, vmem],
        out_specs=vmem,
        cost_estimate=pl.CostEstimate(flops=flops,
                                      transcendentals=transcendentals,
                                      bytes_accessed=bytes_accessed),
    )(latent.astype(jnp.float32), w1_all, w2_big, bias_slab)

    return dict(
        Gs=out[..., 0 * S:1 * S],
        twoRs=out[..., 1 * S:2 * S],
        c_hps=out[..., 2 * S:3 * S],
        c_bps=out[..., 3 * S:4 * S],
        c_lps=out[..., 4 * S:5 * S],
        cs=out[..., 5 * S:6 * S],
    )


# --------------------------- pure-JAX reference -------------------------------

def ref_forward(latent, p):
    def linlin(x, w1, b1, w2, b2):
        y = jnp.einsum("cm,bmn->bcn", w1, x) + b1[None, :, None]
        return jnp.einsum("bcn,sn->bcs", y, w2) + b2[None, None, :]

    gs = linlin(latent, p["gs_w1"], p["gs_b1"], p["gs_w2"], p["gs_b2"])
    tr = linlin(latent, p["tr_w1"], p["tr_b1"], p["tr_w2"], p["tr_b2"])
    cs = linlin(latent, p["cs_w1"], p["cs_b1"], p["cs_w2"], p["cs_b2"])

    cs = 10.0 ** (-jax.nn.softplus(cs - 3.0))
    gs = jnp.tan(0.5 * jax.nn.sigmoid(gs) * np.pi)
    tr = 2.0 * jax.nn.softplus(tr) / np.log(2.0)
    tr = jnp.concatenate([tr[..., :1] + np.sqrt(2.0), tr[..., 1:-1],
                          tr[..., -1:] + np.sqrt(2.0)], -1)
    c_hps = jnp.concatenate([jnp.ones_like(cs[..., :1]),
                             jnp.ones_like(cs[..., 1:-1]), cs[..., -1:]], -1)
    c_bps = jnp.concatenate([tr[..., :1] * jnp.sqrt(cs[..., :1]),
                             tr[..., 1:-1] * cs[..., 1:-1],
                             tr[..., -1:] * jnp.sqrt(cs[..., -1:])], -1)
    c_lps = jnp.concatenate([cs[..., :1], jnp.ones_like(cs[..., 1:-1]),
                             jnp.ones_like(cs[..., -1:])], -1)
    return dict(Gs=gs, twoRs=tr, c_hps=c_hps, c_bps=c_bps, c_lps=c_lps, cs=cs)


# --------------------------------- main ---------------------------------------

if __name__ == "__main__":
    # Small shapes consistent with the module's forward:
    #   input_shape=(M, N)=(16, 32), num_channel C=8, svf_per_channel S=16, batch B=2
    B, M, N = 2, 16, 32
    C, S = 8, 16
    sr = 48000
    f_init = (40.0, 12000.0)

    key = jax.random.PRNGKey(0)
    keys = jax.random.split(key, 10)
    scale = 0.05

    p = {
        "gs_w1": scale * jax.random.normal(keys[0], (C, M), jnp.float32),
        "gs_b1": scale * jax.random.normal(keys[1], (C,), jnp.float32),
        "gs_w2": scale * jax.random.normal(keys[2], (S, N), jnp.float32),
        "tr_w1": scale * jax.random.normal(keys[3], (C, M), jnp.float32),
        "tr_b1": scale * jax.random.normal(keys[4], (C,), jnp.float32),
        "tr_w2": scale * jax.random.normal(keys[5], (S, N), jnp.float32),
        "tr_b2": scale * jax.random.normal(keys[6], (S,), jnp.float32),
        "cs_w1": scale * jax.random.normal(keys[7], (C, M), jnp.float32),
        "cs_b1": scale * jax.random.normal(keys[8], (C,), jnp.float32),
        "cs_w2": scale * jax.random.normal(keys[9], (S, N), jnp.float32),
    }
    # Special dense_2 biases from __init__:
    g_freqs = f_init[0] * (f_init[1] / f_init[0]) ** jnp.linspace(0.0, 1.0, S)
    p["gs_b2"] = jnp.log(2.0 * g_freqs / (sr - 2.0 * g_freqs)).astype(jnp.float32)
    p["cs_b2"] = 2.0 * jnp.ones((S,), jnp.float32)

    latent = jax.random.normal(jax.random.PRNGKey(42), (B, M, N), jnp.float32)

    packed = pack_peq_params(p, batch=B, parallel=True)   # hoisted out of the hot path
    out = peq_decoder(latent, packed)
    out = jax.block_until_ready(out)

    ref = ref_forward(latent, p)
    for k in ("Gs", "twoRs", "c_hps", "c_bps", "c_lps", "cs"):
        np.testing.assert_allclose(np.asarray(out[k]), np.asarray(ref[k]),
                                   rtol=1e-4, atol=1e-4)

    print("KERNEL_OK")
</pallas_src>

<mosaic_0001>
module attributes {stable_mosaic.version = 11 : i64} {
  func.func @peq_decoder_kernel(%arg0: memref<2x16x32xf32, #tpu.memory_space<vmem>>, %arg1: memref<24x16xf32, #tpu.memory_space<vmem>>, %arg2: memref<64x96xf32, #tpu.memory_space<vmem>>, %arg3: memref<24x96xf32, #tpu.memory_space<vmem>>, %arg4: memref<2x8x128xf32, #tpu.memory_space<vmem>>) attributes {dimension_semantics = [], scalar_prefetch = 0 : i64, scratch_operands = 0 : i64, tpu.core_type = #tpu.core_type<tc>} {
    %c0 = arith.constant 0 : index
    %c0_0 = arith.constant 0 : index
    %c0_1 = arith.constant 0 : index
    %0 = vector.load %arg0[%c0, %c0_0, %c0_1] : memref<2x16x32xf32, #tpu.memory_space<vmem>>, vector<1x16x32xf32>
    %1 = vector.shape_cast %0 : vector<1x16x32xf32> to vector<16x32xf32>
    %c1 = arith.constant 1 : index
    %c0_2 = arith.constant 0 : index
    %c0_3 = arith.constant 0 : index
    %2 = vector.load %arg0[%c1, %c0_2, %c0_3] : memref<2x16x32xf32, #tpu.memory_space<vmem>>, vector<1x16x32xf32>
    %3 = vector.shape_cast %2 : vector<1x16x32xf32> to vector<16x32xf32>
    %4 = tpu.concatenate %1, %3 in 1 : vector<16x32xf32>, vector<16x32xf32> -> vector<16x64xf32>
    %c0_4 = arith.constant 0 : index
    %c0_5 = arith.constant 0 : index
    %5 = vector.load %arg1[%c0_4, %c0_5] : memref<24x16xf32, #tpu.memory_space<vmem>>, vector<24x16xf32>
    %cst = arith.constant dense<0.000000e+00> : vector<24x64xf32>
    %6 = tpu.matmul %5, %4, %cst {dimension_numbers = #tpu.dot_dimension_numbers<[1], [0], [0], [1], [0, 0, 1, 1], [], []>} : vector<24x16xf32>, vector<16x64xf32>, vector<24x64xf32> -> vector<24x64xf32>
    %c0_6 = arith.constant 0 : index
    %c0_7 = arith.constant 0 : index
    %7 = vector.load %arg2[%c0_6, %c0_7] : memref<64x96xf32, #tpu.memory_space<vmem>>, vector<64x96xf32>
    %cst_8 = arith.constant dense<0.000000e+00> : vector<24x96xf32>
    %8 = tpu.matmul %6, %7, %cst_8 {dimension_numbers = #tpu.dot_dimension_numbers<[1], [0], [0], [1], [0, 0, 1, 1], [], []>} : vector<24x64xf32>, vector<64x96xf32>, vector<24x96xf32> -> vector<24x96xf32>
    %c0_9 = arith.constant 0 : index
    %c0_10 = arith.constant 0 : index
    %9 = vector.load %arg3[%c0_9, %c0_10] : memref<24x96xf32, #tpu.memory_space<vmem>>, vector<24x96xf32>
    %10 = arith.addf %8, %9 : vector<24x96xf32>
    %11 = vector.extract_strided_slice %10 {offsets = [0, 0], sizes = [8, 16], strides = [1, 1]} : vector<24x96xf32> to vector<8x16xf32>
    %12 = vector.extract_strided_slice %10 {offsets = [0, 48], sizes = [8, 16], strides = [1, 1]} : vector<24x96xf32> to vector<8x16xf32>
    %13 = tpu.concatenate %11, %12 in 1 : vector<8x16xf32>, vector<8x16xf32> -> vector<8x32xf32>
    %14 = vector.extract_strided_slice %10 {offsets = [8, 16], sizes = [8, 16], strides = [1, 1]} : vector<24x96xf32> to vector<8x16xf32>
    %15 = vector.extract_strided_slice %10 {offsets = [8, 64], sizes = [8, 16], strides = [1, 1]} : vector<24x96xf32> to vector<8x16xf32>
    %16 = tpu.concatenate %14, %15 in 1 : vector<8x16xf32>, vector<8x16xf32> -> vector<8x32xf32>
    %17 = vector.extract_strided_slice %10 {offsets = [16, 32], sizes = [8, 16], strides = [1, 1]} : vector<24x96xf32> to vector<8x16xf32>
    %18 = vector.extract_strided_slice %10 {offsets = [16, 80], sizes = [8, 16], strides = [1, 1]} : vector<24x96xf32> to vector<8x16xf32>
    %19 = tpu.concatenate %17, %18 in 1 : vector<8x16xf32>, vector<8x16xf32> -> vector<8x32xf32>
    %20 = tpu.concatenate %16, %19 in 1 : vector<8x32xf32>, vector<8x32xf32> -> vector<8x64xf32>
    %21 = math.tanh %13 : vector<8x32xf32>
    %cst_11 = arith.constant 5.000000e-01 : f32
    %22 = vector.broadcast %cst_11 : f32 to vector<8x32xf32>
    %23 = arith.mulf %22, %21 : vector<8x32xf32>
    %cst_12 = arith.constant 5.000000e-01 : f32
    %24 = vector.broadcast %cst_12 : f32 to vector<8x32xf32>
    %25 = arith.addf %24, %23 : vector<8x32xf32>
    %cst_13 = arith.constant 1.57079637 : f32
    %26 = vector.broadcast %cst_13 : f32 to vector<8x32xf32>
    %27 = arith.mulf %26, %25 : vector<8x32xf32>
    %28 = math.cos %27 : vector<8x32xf32>
    %29 = tpu.reciprocal %28 {approx = true} : vector<8x32xf32> -> vector<8x32xf32>
    %30 = arith.mulf %28, %29 : vector<8x32xf32>
    %cst_14 = arith.constant 2.000000e+00 : f32
    %31 = vector.broadcast %cst_14 : f32 to vector<8x32xf32>
    %32 = arith.subf %31, %30 : vector<8x32xf32>
    %33 = arith.mulf %29, %32 : vector<8x32xf32>
    %34 = math.sin %27 : vector<8x32xf32>
    %35 = arith.mulf %34, %33 : vector<8x32xf32>
    %cst_15 = arith.constant 0.000000e+00 : f32
    %36 = vector.broadcast %cst_15 : f32 to vector<8x64xf32>
    %37 = arith.maximumf %20, %36 : vector<8x64xf32>
    %38 = vector.broadcast %cst_15 : f32 to vector<8x64xf32>
    %39 = arith.subf %20, %38 : vector<8x64xf32>
    %40 = arith.cmpf one, %39, %39 : vector<8x64xf32>
    %41 = vector.broadcast %cst_15 : f32 to vector<8x64xf32>
    %42 = arith.addf %20, %41 : vector<8x64xf32>
    %43 = math.absf %39 : vector<8x64xf32>
    %cst_16 = arith.constant 0.000000e+00 : f32
    %44 = vector.broadcast %cst_16 : f32 to vector<8x64xf32>
    %45 = arith.subf %44, %43 : vector<8x64xf32>
    %46 = math.exp %45 : vector<8x64xf32>
    %47 = math.log1p %46 : vector<8x64xf32>
    %48 = arith.addf %37, %47 : vector<8x64xf32>
    %49 = arith.select %40, %42, %48 : vector<8x64xi1>, vector<8x64xf32>
    %50 = vector.extract_strided_slice %49 {offsets = [0, 0], sizes = [8, 32], strides = [1, 1]} : vector<8x64xf32> to vector<8x32xf32>
    %cst_17 = arith.constant 2.885390e+00 : f32
    %51 = vector.broadcast %cst_17 : f32 to vector<8x32xf32>
    %52 = arith.mulf %51, %50 : vector<8x32xf32>
    %cst_18 = arith.constant 0.000000e+00 : f32
    %cst_19 = arith.constant 2.30258512 : f32
    %53 = arith.subf %cst_18, %cst_19 : f32
    %54 = vector.extract_strided_slice %49 {offsets = [0, 32], sizes = [8, 32], strides = [1, 1]} : vector<8x64xf32> to vector<8x32xf32>
    %55 = vector.broadcast %53 : f32 to vector<8x32xf32>
    %56 = arith.mulf %55, %54 : vector<8x32xf32>
    %57 = math.exp %56 : vector<8x32xf32>
    %58 = tpu.iota {dimensions = array<i32: 1>} : vector<8x16xi32>
    %59 = tpu.concatenate %58, %58 in 1 : vector<8x16xi32>, vector<8x16xi32> -> vector<8x32xi32>
    %c0_i32 = arith.constant 0 : i32
    %60 = vector.broadcast %c0_i32 : i32 to vector<8x32xi32>
    %61 = arith.cmpi eq, %59, %60 : vector<8x32xi32>
    %c15_i32 = arith.constant 15 : i32
    %62 = vector.broadcast %c15_i32 : i32 to vector<8x32xi32>
    %63 = arith.cmpi eq, %59, %62 : vector<8x32xi32>
    %64 = arith.ori %61, %63 : vector<8x32xi1>
    %cst_20 = arith.constant 1.000000e+00 : f32
    %65 = vector.broadcast %cst_20 : f32 to vector<8x32xf32>
    %cst_21 = arith.constant 1.41421354 : f32
    %cst_22 = arith.constant 0.000000e+00 : f32
    %66 = vector.broadcast %cst_21 : f32 to vector<8x32xf32>
    %67 = vector.broadcast %cst_22 : f32 to vector<8x32xf32>
    %68 = arith.select %64, %66, %67 : vector<8x32xi1>, vector<8x32xf32>
    %69 = arith.addf %52, %68 : vector<8x32xf32>
    %70 = math.sqrt %57 : vector<8x32xf32>
    %71 = arith.select %63, %57, %65 : vector<8x32xi1>, vector<8x32xf32>
    %72 = arith.select %61, %57, %65 : vector<8x32xi1>, vector<8x32xf32>
    %73 = arith.select %64, %70, %57 : vector<8x32xi1>, vector<8x32xf32>
    %74 = arith.mulf %69, %73 : vector<8x32xf32>
    %75 = vector.extract_strided_slice %35 {offsets = [0, 0], sizes = [8, 16], strides = [1, 1]} : vector<8x32xf32> to vector<8x16xf32>
    %76 = vector.extract_strided_slice %69 {offsets = [0, 0], sizes = [8, 16], strides = [1, 1]} : vector<8x32xf32> to vector<8x16xf32>
    %77 = vector.extract_strided_slice %71 {offsets = [0, 0], sizes = [8, 16], strides = [1, 1]} : vector<8x32xf32> to vector<8x16xf32>
    %78 = vector.extract_strided_slice %74 {offsets = [0, 0], sizes = [8, 16], strides = [1, 1]} : vector<8x32xf32> to vector<8x16xf32>
    %79 = vector.extract_strided_slice %72 {offsets = [0, 0], sizes = [8, 16], strides = [1, 1]} : vector<8x32xf32> to vector<8x16xf32>
    %80 = vector.extract_strided_slice %57 {offsets = [0, 0], sizes = [8, 16], strides = [1, 1]} : vector<8x32xf32> to vector<8x16xf32>
    %cst_23 = arith.constant 0.000000e+00 : f32
    %81 = vector.broadcast %cst_23 : f32 to vector<8x32xf32>
    %82 = tpu.concatenate %75, %76, %77, %78, %79, %80, %81 in 1 : vector<8x16xf32>, vector<8x16xf32>, vector<8x16xf32>, vector<8x16xf32>, vector<8x16xf32>, vector<8x16xf32>, vector<8x32xf32> -> vector<8x128xf32>
    %c0_24 = arith.constant 0 : index
    %c0_25 = arith.constant 0 : index
    %c0_26 = arith.constant 0 : index
    %83 = vector.load %arg4[%c0_24, %c0_25, %c0_26] : memref<2x8x128xf32, #tpu.memory_space<vmem>>, vector<1x8x128xf32>
    %84 = vector.shape_cast %83 : vector<1x8x128xf32> to vector<8x128xf32>
    %85 = vector.shape_cast %82 : vector<8x128xf32> to vector<1x8x128xf32>
    tpu.vector_store %arg4[%c0_24, %c0_25, %c0_26], %85 {strides = array<i32>} : memref<2x8x128xf32, #tpu.memory_space<vmem>>, vector<1x8x128xf32>,
    %86 = vector.extract_strided_slice %35 {offsets = [0, 16], sizes = [8, 16], strides = [1, 1]} : vector<8x32xf32> to vector<8x16xf32>
    %87 = vector.extract_strided_slice %69 {offsets = [0, 16], sizes = [8, 16], strides = [1, 1]} : vector<8x32xf32> to vector<8x16xf32>
    %88 = vector.extract_strided_slice %71 {offsets = [0, 16], sizes = [8, 16], strides = [1, 1]} : vector<8x32xf32> to vector<8x16xf32>
    %89 = vector.extract_strided_slice %74 {offsets = [0, 16], sizes = [8, 16], strides = [1, 1]} : vector<8x32xf32> to vector<8x16xf32>
    %90 = vector.extract_strided_slice %72 {offsets = [0, 16], sizes = [8, 16], strides = [1, 1]} : vector<8x32xf32> to vector<8x16xf32>
    %91 = vector.extract_strided_slice %57 {offsets = [0, 16], sizes = [8, 16], strides = [1, 1]} : vector<8x32xf32> to vector<8x16xf32>
    %cst_27 = arith.constant 0.000000e+00 : f32
    %92 = vector.broadcast %cst_27 : f32 to vector<8x32xf32>
    %93 = tpu.concatenate %86, %87, %88, %89, %90, %91, %92 in 1 : vector<8x16xf32>, vector<8x16xf32>, vector<8x16xf32>, vector<8x16xf32>, vector<8x16xf32>, vector<8x16xf32>, vector<8x32xf32> -> vector<8x128xf32>
    %c1_28 = arith.constant 1 : index
    %c0_29 = arith.constant 0 : index
    %c0_30 = arith.constant 0 : index
    %94 = vector.load %arg4[%c1_28, %c0_29, %c0_30] : memref<2x8x128xf32, #tpu.memory_space<vmem>>, vector<1x8x128xf32>
    %95 = vector.shape_cast %94 : vector<1x8x128xf32> to vector<8x128xf32>
    %96 = vector.shape_cast %93 : vector<8x128xf32> to vector<1x8x128xf32>
    tpu.vector_store %arg4[%c1_28, %c0_29, %c0_30], %96 {strides = array<i32>} : memref<2x8x128xf32, #tpu.memory_space<vmem>>, vector<1x8x128xf32>,
    return
  }
}

</mosaic_0001>

<bundles_post_ra>
// kernel: peq_decoder.1
= control target key start
LH: loop header
LB: loop body
LE: loop exit
PB: predicated region body
PF: predicated region fallthrough
CT: control target
= control target key end

     0   :  { %9 = vsyncpa [#allocation3], 0  ;;  %s971_s0 = inlined_call_operand.vmem [shape: f32[2,16,32], index: 0, kind: input, shape index: {}]   ;;  %s972_s1 = inlined_call_operand.vmem [shape: f32[24,16], index: 1, kind: input, shape index: {}]   ;;  %s973_s2 = inlined_call_operand.hbm [shape: f32[64,96], index: 2, kind: input, shape index: {}]   ;;  %s974_s3 = inlined_call_operand.hbm [shape: f32[24,96], index: 3, kind: input, shape index: {}]   ;;  %s975_s4 = inlined_call_operand.vmem [shape: f32[2,8,128], index: 4, kind: output, shape index: {}]  }
   0x1   :  { %10 = vsyncpa [#allocation5], 0  ;;  %s777_s15 = smov [#allocation2]  }
   0x2   :  { %s20_s16 = sshll.u32 %s777_s15, 4  ;;  %s21_s16 = int_to_ptr.vmem [resolvable:$true] %s20_s16 }
   0x3   :  { %s741_s17 = scalar_lea.vmem %s21_s16, 1024  ;;  %p746_p1 = scmp.lt.s32.totalorder %s21_s16, %s21_s16 }
   0x4   :  { %p742_p0 = scmp.ne.s32.totalorder %s21_s16, %s741_s17  ;;  %p747_p2 = scmp.lt.s32.totalorder %s741_s17, %s741_s17 }
   0x6   :  { %p748_p3 = por %p747_p2, %p746_p1 }
   0x8   :  { %p749_p4 = pnand %p748_p3, %p742_p0 }
   0xa   :  { %752 = shalt.err (!%p749_p4)
}
   0xb   :  { %s778_s18 = smov 128   ;;  %s779_s19 = smov 8  }
   0xc   :  { %26 = dma.hbm_to_vmem [thread:$0]  %s973_s2, 1024, %s21_s16, [#allocation3], %s778_s18, %s778_s18, %s779_s19  }
   0xd   :  { %s780_s22 = smov [#allocation4]  }
   0xe   :  { %s32_s23 = sshll.u32 %s780_s22, 4  ;;  %s33_s23 = int_to_ptr.vmem [resolvable:$true] %s32_s23 }
   0xf   :  { %s761_s24 = scalar_lea.vmem %s33_s23, 384  ;;  %p766_p6 = scmp.lt.s32.totalorder %s33_s23, %s33_s23 }
  0x10   :  { %p762_p5 = scmp.ne.s32.totalorder %s33_s23, %s761_s24  ;;  %p767_p7 = scmp.lt.s32.totalorder %s761_s24, %s761_s24 }
  0x12   :  { %p768_p8 = por %p767_p7, %p766_p6 }
  0x14   :  { %p769_p9 = pnand %p768_p8, %p762_p5 }
  0x16   :  { %772 = shalt.err (!%p769_p9)
}
  0x17   :  { %38 = dma.hbm_to_vmem [thread:$0]  %s974_s3, 384, %s33_s23, [#allocation5], %s778_s18, %s778_s18, %s779_s19  }
  0x18   :  { %773 = dma.done.wait [#allocation3], 1024  }
  0x19   :  { %774 = vsyncadd [#allocation3], 4294966272 }
  0x1a   :  { %775 = dma.done.wait [#allocation5], 384  }
  0x1b   :  { %776 = vsyncadd [#allocation5], 4294966912  ;;  %v781_v0 = vmov 0.0   ;;  %vm782_vm0 = vmmov 0   ;;  %v608_v1 = vld [vmem:[%s971_s0 + $0x18] sm:$0xff]  ;;  %s783_s3 = smov 32   ;;  %v519_v39 = vlaneseq }
  0x1c   :  { %640 = vmatprep.subr.mxu0 %v781_v0  ;;  %644 = vmatprep.mubr.msk.f32.mxu0 %vm782_vm0, %v781_v0  ;;  %v607_v2 = vld [vmem:[%s971_s0 + $0x10] sm:$0xff]  ;;  %v161_v3 = vld [vmem:[#allocation2 + $0x38] sm:$0xff]  ;;  %v159_v5 = vld [vmem:[#allocation2 + $0x28] sm:$0xff]  ;;  %vm58_vm1 = vcmask 261120   ;;  %vm64_vm2 = vcmask 130048   ;;  %vm165_vm3 = vcmask 523264  }
  0x1d   :  { %678 = vmatprep.subr.mxu1 %v781_v0  ;;  %672 = vmatprep.mubr.msk.f32.mxu1 %vm782_vm0, %v781_v0  ;;  %v160_v4 = vld [vmem:[#allocation2 + $0x30] sm:$0xff]  ;;  %v158_v6 = vld [vmem:[#allocation2 + $0x20] sm:$0xff]  ;;  %v157_v7 = vld [vmem:[#allocation2 + $0x18] sm:$0xff]  ;;  %s785_s13 = smov 96   ;;  %s786_s14 = smov 64   ;;  %v894_v42 = vand.u32 127, %v519_v39 }
  0x1e   :  { %54 = vrot.lane.b32.xlu0 %v608_v1, %s783_s3  ;;  %686 = vmatpush3.msra.mxu1 %v161_v3  ;;  %v156_v8 = vld [vmem:[#allocation2 + $0x10] sm:$0xff]  ;;  %v155_v9 = vld [vmem:[#allocation2 + $0x8] sm:$0xff]  ;;  %v45_v13 = vld [vmem:[%s971_s0] sm:$0xff]  ;;  %s787_s15 = smov 80   ;;  %s788_s16 = smov 16  }
  0x1f   :  { %679 = vmatprep.subr.mxu1 %v781_v0  ;;  %v46_v10 = vld [vmem:[%s971_s0 + $0x8] sm:$0xff]  ;;  %v61_v15 = vld [vmem:[%s972_s1] sm:$0xff]  ;;  %v63_v18 = vld [vmem:[%s972_s1 + $0x10] sm:$0xff]  ;;  %v789_v60 = vmov 2102212464   ;;  %s795_s17 = smov 48  }
  0x20   :  { %687 = vmatpush3.msra.mxu1 %v160_v4  ;;  %v62_v17 = vld [vmem:[%s972_s1 + $0x8] sm:$0xff]  ;;  %v154_v19 = vld [vmem:[#allocation2] sm:$0xff]  ;;  %v164_v32 = vld [vmem:[#allocation4 + $0x10] sm:$0xff]  ;;  %s784_s1 = smov 112   ;;  %v790_v62 = vmov 920167782  }
  0x21   :  { %680 = vmatprep.subr.mxu1 %v781_v0  ;;  %v163_v28 = vld [vmem:[#allocation4 + $0x8] sm:$0xff]  ;;  %v162_v36 = vld [vmem:[#allocation4] sm:$0xff] }
  0x22   :  { %52 = vrot.lane.b32.xlu0 %v607_v2, %s783_s3  ;;  %688 = vmatpush3.msra.mxu1 %v159_v5 }
  0x23   :  { %681 = vmatprep.subr.mxu1 %v781_v0 }
  0x24   :  { %689 = vmatpush3.msra.mxu1 %v158_v6 }
  0x25   :  { %682 = vmatprep.subr.mxu1 %v781_v0 }
  0x26   :  { %690 = vmatpush3.msra.mxu1 %v157_v7 }
  0x27   :  { %683 = vmatprep.subr.mxu1 %v781_v0 }
  0x28   :  { %691 = vmatpush3.msra.mxu1 %v156_v8 }
  0x29   :  { %684 = vmatprep.subr.mxu1 %v781_v0 }
  0x2a   :  { %692 = vmatpush3.msra.mxu1 %v155_v9 }
  0x2b   :  { %685 = vmatprep.subr.mxu1 %v781_v0 }
  0x2c   :  { %693 = vmatpush3.msra.mxu1 %v154_v19 }
  0x90   :  { %v55_v11 = vpop.permute.xlu0 %54 }
  0x91   :  { %v60_v12 = vsel %vm58_vm1, %v46_v10, %v55_v11  ;;  %v794_v10 = vmov 2131351028  }
  0x92   :  { %641 = vmatpush3.msra.mxu0 %v60_v12 }
  0x93   :  { %642 = vmatprep.subr.mxu0 %v781_v0 }
  0x94   :  { %v53_v14 = vpop.permute.xlu0 %52 }
  0x95   :  { %v59_v16 = vsel %vm58_vm1, %v45_v13, %v53_v14 }
  0x96   :  { %643 = vmatpush3.msra.mxu0 %v59_v16 }
  0x97   :  { %645 = vmatmul.mubr.msk.f32.vlgmr.msra.gmra.mxu0 %vm64_vm2, %v61_v15  ;;  %653 = vmatprep.subr.mxu0 %v781_v0 }
  0x98   :  { %647 = vmatprep.mubr.msk.f32.mxu0 %vm782_vm0, %v781_v0  ;;  %654 = vmatpush3.msra.mxu0 %v161_v3  ;;  %v791_v3 = vmov 1326507024  }
  0x99   :  { %655 = vmatprep.subr.mxu0 %v781_v0 }
  0x9a   :  { %656 = vmatpush3.msra.mxu0 %v160_v4 }
  0x9b   :  { %648 = vmatmul.mubr.msk.f32.gmra.mxu0 %vm64_vm2, %v62_v17  ;;  %657 = vmatprep.subr.mxu0 %v781_v0 }
  0x9c   :  { %650 = vmatprep.mubr.msk.f32.mxu0 %vm782_vm0, %v781_v0  ;;  %658 = vmatpush3.msra.mxu0 %v159_v5  ;;  %v792_v5 = vmov 683565275  }
  0x9d   :  { %659 = vmatprep.subr.mxu0 %v781_v0 }
  0x9e   :  { %660 = vmatpush3.msra.mxu0 %v158_v6 }
  0x9f   :  { %651 = vmatmul.mubr.msk.f32.gmra.mxu0 %vm64_vm2, %v63_v18  ;;  %661 = vmatprep.subr.mxu0 %v781_v0 }
  0xa0   :  { %662 = vmatpush3.msra.mxu0 %v157_v7  ;;  %669 = vmatprep.mubr.msk.f32.mxu0 %vm782_vm0, %v781_v0  ;;  %v793_v7 = vmov 2475754826  }
  0xa1   :  { %663 = vmatprep.subr.mxu0 %v781_v0 }
  0xa2   :  { %664 = vmatpush3.msra.mxu0 %v156_v8 }
  0xa3   :  { %665 = vmatprep.subr.mxu0 %v781_v0 }
  0xa4   :  { %666 = vmatpush3.msra.mxu0 %v155_v9 }
  0xa5   :  { %667 = vmatprep.subr.mxu0 %v781_v0 }
  0xa6   :  { %668 = vmatpush3.msra.mxu0 %v154_v19 }
 0x157   :  { %v140_v20 = vpop.f32.mrf.mxu0 }
 0x158   :  { %670 = vmatmul.mubr.msk.f32.vlgmr.msra.gmra.mxu0 %vm165_vm3, %v140_v20 }
 0x159   :  { %v646_v21 = vpop.f32.mrf.mxu0 }
 0x15b   :  { %v145_v22 = vpop.f32.mrf.mxu0 }
 0x15c   :  { %673 = vmatmul.mubr.msk.f32.vlgmr.msra.gmra.mxu1 %vm165_vm3, %v145_v22 }
 0x15d   :  { %v649_v23 = vpop.f32.mrf.mxu0  ;;  %675 = vmatprep.mubr.msk.f32.mxu1 %vm782_vm0, %v781_v0 }
 0x15f   :  { %v150_v24 = vpop.f32.mrf.mxu0 }
 0x160   :  { %676 = vmatmul.mubr.msk.f32.gmra.mxu1 %vm165_vm3, %v150_v24 }
 0x161   :  { %v652_v25 = vpop.f32.mrf.mxu0 }
 0x218   :  { %v241_v26 = vpop.f32.mrf.mxu0 }
 0x219   :  { %v242_v37 = vadd.f32 %v241_v26, %v162_v36 }
 0x21a   :  { %v671_v27 = vpop.f32.mrf.mxu0 }
 0x21c   :  { %v246_v29 = vpop.f32.mrf.mxu1 }
 0x21d   :  { %v247_v30 = vadd.f32 %v246_v29, %v163_v28 }
 0x21e   :  { %v674_v31 = vpop.f32.mrf.mxu1 }
 0x21f   :  { %261 = vrot.lane.b32.xlu0 %v247_v30, %s784_s1 }
 0x220   :  { %v251_v33 = vpop.f32.mrf.mxu1 }
 0x221   :  { %v252_v34 = vadd.f32 %v251_v33, %v164_v32 }
 0x222   :  { %v677_v35 = vpop.f32.mrf.mxu1 }
 0x223   :  { %269 = vrot.lane.b32.xlu1 %v252_v34, %s785_s13 }
 0x227   :  { %272 = vrot.lane.b32.xlu1 %v252_v34, %s786_s14 }
 0x22b   :  { %264 = vrot.lane.b32.xlu1 %v247_v30, %s787_s15 }
 0x22f   :  { %256 = vrot.lane.b32.xlu1 %v242_v37, %s785_s13 }
 0x295   :  { %v270_v38 = vpop.permute.xlu1 %269 }
 0x299   :  { %v273_v40 = vpop.permute.xlu1 %272 }
 0x29a   :  { %v275_v41 = vsel %vm64_vm2, %v270_v38, %v273_v40 }
 0x29b   :  { %277 = vrot.lane.b32.xlu0 %v275_v41, %s783_s3 }
 0x29d   :  { %v896_v43 = vpop.permute.xlu1 %264 }
 0x29f   :  { %521 = vrot.lane.b32.xlu0 %v894_v42, %s788_s16 }
 0x2a1   :  { %v257_v44 = vpop.permute.xlu1 %256 }
 0x2a2   :  { %v259_v45 = vsel %vm64_vm2, %v242_v37, %v257_v44 }
 0x2a3   :  { %717 = vtanh.f32 %v259_v45 }
 0x2b0   :  { %v718_v46 = vpop.eup %717 }
 0x2b1   :  { %v282_v47 = vmul.f32 0.5, %v718_v46 }
 0x2b3   :  { %v283_v48 = vadd.f32 0.5, %v282_v47 }
 0x2b5   :  { %v901_v49 = vmul.f32 1.5707964, %v283_v48 }
 0x2b7   :  { %v288_v50 = vand.u32 2139095040, %v901_v49  ;;  %v285_v53 = vand.u32 2147483647, %v901_v49  ;;  %vm287_vm11 = vcmp.lt.s32.totalorder %v901_v49, 0 }
 0x2b9   :  { %v289_v51 = vshrl.u32 %v288_v50, 23  ;;  %v292_v56 = vand.u32 8388607, %v285_v53  ;;  %vm286_vm12 = vcmp.le.f32.partialorder %v285_v53, 0.7853982 }
 0x2bb   :  { %v615_v52 = vadd.s32 4294967169, %v289_v51  ;;  %v293_v1 = vor.u32 8388608, %v292_v56 }
 0x2bd   :  { %v295_v54 = vadd.s32 1, %v615_v52  ;;  %v333_v19 = vshll.u32 %v293_v1, 8 }
 0x2bf   :  { %vm296_vm4 = vcmp.gt.s32.totalorder %v295_v54, 0 }
 0x2c0   :  { %v297_v55 = vsel %vm296_vm4, %v295_v54, 0 }
 0x2c1   :  { %v299_v57 = vand.u32 31, %v297_v55  ;;  %v298_v59 = vshrl.u32 %v297_v55, 5 }
 0x2c3   :  { %v300_v58 = vsub.s32 32, %v299_v57  ;;  %v311_v61 = vshll.u32 %v789_v60, %v299_v57  ;;  %v314_v63 = vshll.u32 %v790_v62, %v299_v57  ;;  %v302_v6 = vshll.u32 %v792_v5, %v299_v57 }
 0x2c4   :  { %v305_v9 = vshll.u32 %v793_v7, %v299_v57  ;;  %v308_v12 = vshll.u32 %v794_v10, %v299_v57  ;;  %vm320_vm5 = vcmp.lt.s32.totalorder %v298_v59, 4  ;;  %vm317_vm6 = vcmp.lt.s32.totalorder %v298_v59, 1  ;;  %v262_v57 = vpop.permute.xlu0 %261 }
 0x2c5   :  { %v312_v2 = vshrl.u32 %v790_v62, %v300_v58  ;;  %v315_v4 = vshrl.u32 %v791_v3, %v300_v58  ;;  %v303_v8 = vshrl.u32 %v793_v7, %v300_v58  ;;  %v306_v11 = vshrl.u32 %v794_v10, %v300_v58 }
 0x2c6   :  { %v309_v13 = vshrl.u32 %v789_v60, %v300_v58  ;;  %vm319_vm7 = vcmp.lt.s32.totalorder %v298_v59, 3  ;;  %vm318_vm8 = vcmp.lt.s32.totalorder %v298_v59, 2  ;;  %v301_v33 = vshrl.u32 %v792_v5, %v300_v58 }
 0x2c7   :  { %v313_v14 = vor.u32 %v312_v2, %v311_v61  ;;  %v316_v15 = vor.u32 %v315_v4, %v314_v63  ;;  %v304_v16 = vor.u32 %v303_v8, %v302_v6  ;;  %v307_v17 = vor.u32 %v306_v11, %v305_v9 }
 0x2c8   :  { %v310_v18 = vor.u32 %v309_v13, %v308_v12  ;;  %v267_v61 = vsel %vm64_vm2, %v262_v57, %v896_v43 }
 0x2c9   :  { %v326_v20 = vsel %vm320_vm5, %v313_v14, 920167782  ;;  %v330_v21 = vsel %vm320_vm5, %v316_v15, 1326507024  ;;  %v325_v22 = vsel %vm317_vm6, %v304_v16, %v307_v17  ;;  %v321_v34 = vsel %vm317_vm6, %v301_v33, %v304_v16 }
 0x2ca   :  { %v327_v23 = vsel %vm319_vm7, %v310_v18, %v326_v20  ;;  %v329_v24 = vsel %vm317_vm6, %v307_v17, %v310_v18  ;;  %v331_v26 = vsel %vm319_vm7, %v313_v14, %v330_v21  ;;  %v322_v30 = vsel %vm320_vm5, %v310_v18, 2102212464 }
 0x2cb   :  { %v328_v25 = vsel %vm318_vm8, %v325_v22, %v327_v23  ;;  %v332_v27 = vsel %vm318_vm8, %v329_v24, %v331_v26  ;;  %v323_v35 = vsel %vm319_vm7, %v307_v17, %v322_v30  ;;  %vm377_vm5 = vweird.f32 %v901_v49 }
 0x2cc   :  { %v911_v28 = vmul.u32.u64.low %v333_v19, %v328_v25  ;;  %v912_v29 = vmul.u32.u64.high %v333_v19, %v328_v25, %v911_v28  ;;  %v915_v31 = vmul.u32.u64.low %v333_v19, %v332_v27  ;;  %v916_v32 = vmul.u32.u64.high %v333_v19, %v332_v27, %v915_v31 }
 0x2cd   :  { %v324_v37 = vsel %vm318_vm8, %v321_v34, %v323_v35 }
 0x2ce   :  { %v343_v36 = vadd.s32 1, %v912_v29  ;;  %vm342_vm9 = vc.u32 %v916_v32, %v911_v28  ;;  %v340_v39 = vmul.u32 %v333_v19, %v324_v37  ;;  %v341_v58 = vadd.s32 %v911_v28, %v916_v32 }
 0x2d0   :  { %v344_v38 = vsel %vm342_vm9, %v343_v36, %v912_v29 }
 0x2d1   :  { %v345_v40 = vadd.s32 %v344_v38, %v340_v39 }
 0x2d3   :  { %v346_v41 = vadd.s32 536870912, %v345_v40 }
 0x2d5   :  { %v347_v44 = vshrl.u32 %v346_v41, 30 }
 0x2d7   :  { %v348_v45 = vshll.u32 %v347_v44, 30  ;;  %v371_v15 = vsub.s32 4, %v347_v44 }
 0x2d9   :  { %v349_v46 = vsub.s32 %v345_v40, %v348_v45  ;;  %v372_v17 = vsel %vm287_vm11, %v371_v15, %v347_v44 }
 0x2da   :  { %v374_v21 = vsel %vm286_vm12, 0, %v372_v17 }
 0x2db   :  { %v351_v47 = vsub.s32 0, %v349_v46  ;;  %v378_v26 = vand.u32 3, %v374_v21 }
 0x2dd   :  { %v616_v48 = vmin.u32 %v351_v47, %v349_v46  ;;  %vm380_vm15 = vcmp.eq.s32.totalorder %v378_v26, 0  ;;  %vm383_vm0 = vcmp.eq.s32.totalorder %v378_v26, 2  ;;  %vm379_vm4 = vcmp.lt.s32.totalorder %v378_v26, 2 }
 0x2df   :  { %v353_v50 = vclz %v616_v48 }
 0x2e1   :  { %v617_v51 = vadd.s32 4294967294, %v353_v50 }
 0x2e3   :  { %vm618_vm10 = vcmp.lt.s32.totalorder %v617_v51, 0 }
 0x2e4   :  { %v356_v52 = vsel %vm618_vm10, 0, %v617_v51 }
 0x2e5   :  { %v361_v54 = vsub.s32 4294967266, %v356_v52  ;;  %v357_v56 = vsub.s32 32, %v356_v52  ;;  %v358_v1 = vshll.u32 %v349_v46, %v356_v52 }
 0x2e7   :  { %v362_v55 = vadd.s32 127, %v361_v54  ;;  %v359_v60 = vshrl.u32 %v341_v58, %v357_v56 }
 0x2e9   :  { %v363_v59 = vshll.u32 %v362_v55, 23  ;;  %v360_v4 = vor.u32 %v359_v60, %v358_v1 }
 0x2eb   :  { %v364_v2 = vor.u32 4788187, %v363_v59  ;;  %v367_v8 = vcvt.s32.f32 %v360_v4 }
 0x2ed   :  { %v365_v6 = vand.u32 2147483647, %v364_v2 }
 0x2ef   :  { %v368_v9 = vmul.f32 %v367_v8, %v365_v6 }
 0x2f1   :  { %v369_v10 = vxor.u32 2147483648, %v368_v9 }
 0x2f3   :  { %v370_v11 = vsel %vm287_vm11, %v369_v10, %v368_v9 }
 0x2f4   :  { %v373_v43 = vsel %vm286_vm12, %v901_v49, %v370_v11 }
 0x30d   :  { %v278_v62 = vpop.permute.xlu0 %277 }
 0x30e   :  { %v280_v63 = vsel %vm58_vm1, %v267_v61, %v278_v62 }
 0x30f   :  { %v500_v3 = vand.u32 2147483647, %v280_v63  ;;  %v497_v25 = vmax.f32 %v280_v63, 0.0  ;;  %vm498_vm14 = vcmp.ne.f32.partialorder %v280_v63, %v280_v63 }
 0x311   :  { %v501_v5 = vsub.f32 0.0, %v500_v3  ;;  %v522_v36 = vpop.permute.xlu0 %521 }
 0x312   :  { %v523_v38 = vsel %vm64_vm2, %v894_v42, %v522_v36  ;;  %v485_v42 = vadd.s32 3, %v374_v21 }
 0x313   :  { %v502_v7 = vmul.f32 1.442695, %v501_v5  ;;  %vm524_vm6 = vcmp.eq.s32.totalorder %v523_v38, 0  ;;  %vm525_vm7 = vcmp.eq.s32.totalorder %v523_v38, 15 }
 0x314   :  { %vm937_vm8 = vmor %vm524_vm6, %vm525_vm7  ;;  %v486_v48 = vand.u32 3, %v485_v42 }
 0x315   :  { %719 = vpow2.f32 %v502_v7  ;;  %v527_v44 = vsel %vm937_vm8, 1.4142135, %v781_v0 }
 0x316   :  { %721 = vcosq.f32 %v373_v43  ;;  %vm488_vm9 = vcmp.eq.s32.totalorder %v486_v48, 0  ;;  %vm491_vm10 = vcmp.eq.s32.totalorder %v486_v48, 2  ;;  %vm487_vm12 = vcmp.lt.s32.totalorder %v486_v48, 2 }
 0x322   :  { %v720_v12 = vpop.eup %719 }
 0x323   :  { %v504_v13 = vadd.f32 1.0, %v720_v12  ;;  %v507_v14 = vmul.f32 -0.5, %v720_v12  ;;  %v510_v18 = vand.u32 2147483647, %v720_v12  ;;  %v722_v19 = vpop.eup %721 }
 0x324   :  { %v384_v29 = vxor.u32 2147483648, %v722_v19 }
 0x325   :  { %723 = vlog2.f32 %v504_v13  ;;  %v508_v16 = vadd.f32 1.0, %v507_v14  ;;  %vm511_vm13 = vcmp.lt.f32.partialorder %v510_v18, 0.0004427343 }
 0x326   :  { %725 = vsinq.f32 %v373_v43 }
 0x327   :  { %v509_v24 = vmul.f32 %v720_v12, %v508_v16 }
 0x332   :  { %v724_v20 = vpop.eup %723 }
 0x333   :  { %v726_v22 = vpop.eup %725  ;;  %v506_v23 = vmul.f32 0.6931472, %v724_v20 }
 0x334   :  { %v381_v28 = vxor.u32 2147483648, %v726_v22  ;;  %v385_v33 = vsel %vm383_vm0, %v384_v29, %v726_v22  ;;  %v493_v54 = vsel %vm491_vm10, %v384_v29, %v726_v22  ;;  %vm574_vm0 = vcmask 785408  }
 0x335   :  { %v512_v53 = vsel %vm511_vm13, %v509_v24, %v506_v23 }
 0x336   :  { %v513_v27 = vadd.f32 %v512_v53, %v497_v25  ;;  %v382_v32 = vsel %vm380_vm15, %v722_v19, %v381_v28  ;;  %v490_v52 = vsel %vm488_vm9, %v722_v19, %v381_v28  ;;  %vm572_vm15 = vcmask 654336  }
 0x337   :  { %v386_v35 = vsel %vm379_vm4, %v382_v32, %v385_v33  ;;  %v494_v58 = vsel %vm487_vm12, %v490_v52, %v493_v54 }
 0x338   :  { %v514_v30 = vsel %vm498_vm14, %v280_v63, %v513_v27  ;;  %v387_v37 = vsel %vm377_vm5, nan, %v386_v35  ;;  %v495_v60 = vsel %vm377_vm5, nan, %v494_v58  ;;  %vm569_vm14 = vcmask 392192  }
 0x339   :  { %v516_v31 = vmul.f32 -2.3025851, %v514_v30  ;;  %v515_v40 = vmul.f32 2.88539, %v514_v30 }
 0x33b   :  { %v517_v34 = vmul.f32 1.442695, %v516_v31  ;;  %v528_v45 = vadd.f32 %v527_v44, %v515_v40 }
 0x33d   :  { %727 = vpow2.f32 %v517_v34 }
 0x33e   :  { %729 = vrcp.f32 %v387_v37 }
 0x34a   :  { %v728_v41 = vpop.eup %727 }
 0x34b   :  { %537 = vrot.lane.b32.xlu1 %v728_v41, %s785_s13  ;;  %731 = vrsqrt.f32 %v728_v41  ;;  %v730_v46 = vpop.eup %729  ;;  %vm531_vm11 = vcmp.eq.f32.partialorder %v728_v41, inf  ;;  %v534_v56 = vand.u32 2147483648, %v728_v41  ;;  %vm533_vm13 = vcmp.eq.f32.partialorder %v728_v41, 0.0 }
 0x34c   :  { %v389_v47 = vmul.f32 %v730_v46, %v387_v37 }
 0x34e   :  { %v390_v50 = vsub.f32 2.0, %v389_v47 }
 0x34f   :  { %549 = vrot.lane.b32.xlu1 %v528_v45, %s788_s16 }
 0x350   :  { %v391_v57 = vmul.f32 %v730_v46, %v390_v50 }
 0x352   :  { %v496_v61 = vmul.f32 %v495_v60, %v391_v57 }
 0x358   :  { %v732_v51 = vpop.eup %731 }
 0x359   :  { %v530_v55 = vmul.f32 %v732_v51, %v728_v41 }
 0x35b   :  { %v532_v0 = vsel %vm531_vm11, %v728_v41, %v530_v55 }
 0x35c   :  { %v535_v59 = vsel %vm533_vm13, %v534_v56, %v532_v0 }
 0x35d   :  { %543 = vrot.lane.b32.xlu0 %v535_v59, %s785_s13 }
 0x361   :  { %578 = vrot.lane.b32.xlu0 %v496_v61, %s784_s1 }
 0x3bd   :  { %v538_v62 = vpop.permute.xlu1 %537 }
 0x3be   :  { %v540_v63 = vsel %vm525_vm7, %v538_v62, 1.0  ;;  %v541_v1 = vsel %vm524_vm6, %v538_v62, 1.0 }
 0x3bf   :  { %581 = vrot.lane.b32.xlu0 %v540_v63, %s788_s16  ;;  %553 = vrot.lane.b32.xlu1 %v540_v63, %s783_s3 }
 0x3c1   :  { %v550_v4 = vpop.permute.xlu1 %549 }
 0x3c2   :  { %v567_v10 = vsel %vm64_vm2, %v496_v61, %v550_v4 }
 0x3c3   :  { %587 = vrot.lane.b32.xlu0 %v541_v1, %s795_s17  ;;  %561 = vrot.lane.b32.xlu1 %v541_v1, %s786_s14 }
 0x3cf   :  { %v544_v2 = vpop.permute.xlu0 %543 }
 0x3d0   :  { %v546_v49 = vsel %vm937_vm8, %v544_v2, %v538_v62 }
 0x3d1   :  { %v547_v3 = vmul.f32 %v546_v49, %v528_v45 }
 0x3d3   :  { %584 = vrot.lane.b32.xlu0 %v547_v3, %s783_s3  ;;  %557 = vrot.lane.b32.xlu1 %v547_v3, %s795_s17  ;;  %v579_v5 = vpop.permute.xlu0 %578 }
 0x3d4   :  { %v593_v11 = vsel %vm64_vm2, %v579_v5, %v528_v45 }
 0x3d7   :  { %590 = vrot.lane.b32.xlu0 %v728_v41, %s783_s3  ;;  %564 = vrot.lane.b32.xlu1 %v728_v41, %s795_s17 }
 0x431   :  { %v582_v6 = vpop.permute.xlu0 %581  ;;  %v554_v7 = vpop.permute.xlu1 %553 }
 0x432   :  { %v594_v43 = vsel %vm58_vm1, %v593_v11, %v582_v6  ;;  %v568_v12 = vsel %vm58_vm1, %v567_v10, %v554_v7 }
 0x435   :  { %v588_v8 = vpop.permute.xlu0 %587  ;;  %v562_v9 = vpop.permute.xlu1 %561 }
 0x445   :  { %v585_v13 = vpop.permute.xlu0 %584  ;;  %v558_v14 = vpop.permute.xlu1 %557 }
 0x446   :  { %v595_v15 = vsel %vm569_vm14, %v594_v43, %v585_v13  ;;  %v570_v16 = vsel %vm569_vm14, %v568_v12, %v558_v14 }
 0x447   :  { %v596_v17 = vsel %vm165_vm3, %v595_v15, %v588_v8  ;;  %v571_v19 = vsel %vm165_vm3, %v570_v16, %v562_v9 }
 0x449   :  { %v591_v18 = vpop.permute.xlu0 %590  ;;  %v565_v20 = vpop.permute.xlu1 %564 }
 0x44a   :  { %v597_v21 = vsel %vm572_vm15, %v596_v17, %v591_v18  ;;  %v573_v22 = vsel %vm572_vm15, %v571_v19, %v565_v20 }
 0x44b   :  { %v598_v23 = vsel %vm574_vm0, %v597_v21, 0.0  ;;  %v575_v24 = vsel %vm574_vm0, %v573_v22, 0.0 }
 0x44c   :  { %623 = vst [vmem:[%s975_s4 + $0x8] sm:$0xff] %v598_v23  ;;  %576 = vst [vmem:[%s975_s4] sm:$0xff] %v575_v24 }
 0x44d   :  { %605 = vsyncpa [#allocation3], 1 }
 0x44e   :  { %606 = vsyncpa [#allocation5], 1 }

</bundles_post_ra>
